<compile_context>
chip_gen: v7x
topology: tpu7x:2x2x1
jax: 0.10.0
libtpu: 0.0.40
codegen_flags: <defaults>
</compile_context>

<pallas_src>
import functools

import jax
import jax.numpy as jnp
from jax.experimental import pallas as pl
from jax.experimental.pallas import tpu as pltpu

DEFAULT_MARGIN = 0.1
EPS = 1e-6
_LANES = 128
_STEP_BYTES_TARGET = 4 * 1024 * 1024  # fresh HBM bytes (3 inputs) per grid step


def _round_up(x, m):
    return ((x + m - 1) // m) * m


def _vmem_capacity_bytes():
    """Physical VMEM per core, resolved from the device generation.

    v5e/v6e have 128 MiB per TensorCore, v7x has 64 MiB.  Resolving this from
    the device kind (rather than only a trace-time query that can throw under
    AOT/CPU lowering) keeps v5e/v6e from silently getting v7x-sized tiles.
    """
    try:
        info = pltpu.get_tpu_info()
        cap = getattr(info, "vmem_capacity_bytes", None)
        if cap:
            return int(cap)
    except Exception:
        pass
    try:
        kind = jax.devices()[0].device_kind.lower()
    except Exception:
        kind = ""
    if "v7" in kind:
        return 64 * 1024 * 1024
    if kind:
        return 128 * 1024 * 1024
    return 64 * 1024 * 1024  # unknown backend: be conservative


def _choose_block_rows(rows_total, width, itemsize, vmem_bytes):
    """Row tile (of the packed 2-D view) per grid step."""
    if rows_total <= 8:
        return max(int(rows_total), 1)

    # (a) HBM-byte target: ~4 MiB of fresh input per step fully amortizes the
    #     ~0.35 us per-step overhead even at v7x's 3.2 TB/s (~1.1 MB of HBM time).
    hbm_bytes_per_row = 3 * width * itemsize
    tb_bytes = max(8, _STEP_BYTES_TARGET // hbm_bytes_per_row)

    # (b) VMEM budget: 3 inputs x 2 pipeline buffers of the DMA dtype PLUS the
    #     f32 working set inside the kernel (upcasted a/p/n and the 5 products).
    vmem_bytes_per_row = width * (3 * 2 * itemsize + 8 * 4)
    tb_vmem = max(8, (vmem_bytes // 3) // vmem_bytes_per_row)

    tb = min(tb_bytes, tb_vmem)

    # (c) at least two grid steps so v7x's two TensorCores both get work on the
    #     "parallel" grid axis (on v5e/v6e one extra ~0.35 us step is negligible).
    tb = min(tb, _round_up(pl.cdiv(rows_total, 2), 8))

    tb = max(8, (tb // 8) * 8)
    if tb >= rows_total:
        return int(rows_total)
    return int(tb)


def _normalize_block_rows(requested, rows_total):
    """Clamp a caller-supplied row tile to something Mosaic can lower."""
    tb = int(requested)
    if tb >= rows_total or rows_total <= 8:
        return int(rows_total)               # full-dim block is always legal
    tb = max(8, _round_up(tb, 8))            # sublane (8-row) divisibility rule
    return int(min(tb, rows_total))


def _cosine_triplet_kernel(a_ref, p_ref, n_ref, o_ref, *, margin, valid_rows,
                           block_rows, seg_size, num_seg):
    # Upcast once; all five products run at full lane width of the packed tile.
    a = a_ref[...].astype(jnp.float32)       # (TB, num_seg * seg_size)
    p = p_ref[...].astype(jnp.float32)
    n = n_ref[...].astype(jnp.float32)

    ap = a * p
    an = a * n
    aa = a * a
    pp = p * p
    nn = n * n

    # Rows of the (packed) 2-D view that are real data (last tile may be padded).
    row0 = pl.program_id(0) * block_rows
    rows = jax.lax.broadcasted_iota(jnp.int32, (block_rows, 1), 0) + row0
    row_ok = rows < valid_rows

    inv_eps = jnp.float32(1.0 / EPS)
    margin_f = jnp.float32(margin)

    # g-segment lane reduction: each contiguous lane segment of size `seg_size`
    # is one original row's feature vector.  Reductions stay on VPU/XLU (no MXU).
    partial = jnp.zeros((), dtype=jnp.float32)
    for j in range(num_seg):
        lo = j * seg_size
        hi = lo + seg_size
        dot_ap = jnp.sum(ap[:, lo:hi], axis=1, keepdims=True)   # (TB, 1)
        dot_an = jnp.sum(an[:, lo:hi], axis=1, keepdims=True)
        a2 = jnp.sum(aa[:, lo:hi], axis=1, keepdims=True)
        p2 = jnp.sum(pp[:, lo:hi], axis=1, keepdims=True)
        n2 = jnp.sum(nn[:, lo:hi], axis=1, keepdims=True)

        # 1 / max(||x||, eps) == min(rsqrt(||x||^2), 1/eps); rsqrt -> EUP slot.
        inv_na = jnp.minimum(jax.lax.rsqrt(a2), inv_eps)
        inv_np = jnp.minimum(jax.lax.rsqrt(p2), inv_eps)
        inv_nn = jnp.minimum(jax.lax.rsqrt(n2), inv_eps)

        pos_sim = dot_ap * inv_na * inv_np
        neg_sim = dot_an * inv_na * inv_nn

        per_row = jnp.maximum(neg_sim - pos_sim + margin_f, 0.0)
        per_row = jnp.where(row_ok, per_row, 0.0)
        partial = partial + jnp.sum(per_row)

    # Lane-dense output tile; the partial lives only in lane 0 (zeros elsewhere)
    # so the wrapper can reduce the whole output with one plain jnp.sum.
    lane = jax.lax.broadcasted_iota(jnp.int32, (1, _LANES), 1)
    o_ref[...] = jnp.where(lane == 0, partial, jnp.float32(0.0))


def cosine_triplet_loss(anchor, positive, negative, margin=DEFAULT_MARGIN, *,
                        block_rows=None):
    """mean(relu(cos(a, n) - cos(a, p) + margin)) with cos over dim=1.

    `block_rows`, if given, is a row tile of the (possibly lane-packed) 2-D view.
    """
    assert anchor.shape == positive.shape == negative.shape
    assert anchor.ndim == 2
    B, D = anchor.shape

    # Lane packing for small feature dims (zero-copy row-major reshape): view
    # (B, D) as (B/g, g*D) with g = 128 // D so DMA slabs, loads and the
    # elementwise products use all 128 lanes.
    g = _LANES // D if (D < _LANES and _LANES % D == 0) else 1
    if g > 1 and B % g == 0:
        num_seg, rows, width = g, B // g, _LANES
        a2d = anchor.reshape(rows, width)
        p2d = positive.reshape(rows, width)
        n2d = negative.reshape(rows, width)
    else:
        num_seg, rows, width = 1, B, D
        a2d, p2d, n2d = anchor, positive, negative

    vmem_bytes = _vmem_capacity_bytes()
    itemsize = jnp.dtype(anchor.dtype).itemsize
    if block_rows is not None:
        tb = _normalize_block_rows(block_rows, rows)
    else:
        tb = _choose_block_rows(rows, width, itemsize, vmem_bytes)
    num_tiles = pl.cdiv(rows, tb)

    kernel = functools.partial(
        _cosine_triplet_kernel,
        margin=float(margin),
        valid_rows=rows,
        block_rows=tb,
        seg_size=D,
        num_seg=num_seg,
    )

    out = pl.pallas_call(
        kernel,
        out_shape=jax.ShapeDtypeStruct((1, num_tiles * _LANES), jnp.float32),
        grid_spec=pltpu.PrefetchScalarGridSpec(
            num_scalar_prefetch=0,
            grid=(num_tiles,),
            # Double-buffered by default; only add pipeline_mode=pl.Buffered(3)
            # if an xprof trace shows DMA gaps at tile boundaries on v7x.
            in_specs=[
                pl.BlockSpec((tb, width), lambda i: (i, 0)),
                pl.BlockSpec((tb, width), lambda i: (i, 0)),
                pl.BlockSpec((tb, width), lambda i: (i, 0)),
            ],
            out_specs=pl.BlockSpec((1, _LANES), lambda i: (0, i)),
        ),
        compiler_params=pltpu.CompilerParams(
            dimension_semantics=("parallel",),
            # ~48 MiB on v7x (64 MiB physical), ~96 MiB on v5e/v6e (128 MiB).
            vmem_limit_bytes=int(0.75 * vmem_bytes),
        ),
    )(a2d, p2d, n2d)

    # Each tile wrote its partial into lane 0 of its own 128-lane segment and
    # zeros elsewhere, so a plain sum (no strided pick) recovers the total.
    return jnp.sum(out) / jnp.float32(B)


def _reference(anchor, positive, negative, margin=DEFAULT_MARGIN, eps=EPS):
    def cos(x, y):
        x = x.astype(jnp.float32)
        y = y.astype(jnp.float32)
        dot = jnp.sum(x * y, axis=1)
        nx = jnp.maximum(jnp.sqrt(jnp.sum(x * x, axis=1)), eps)
        ny = jnp.maximum(jnp.sqrt(jnp.sum(y * y, axis=1)), eps)
        return dot / (nx * ny)

    pos_sim = cos(anchor, positive)
    neg_sim = cos(anchor, negative)
    return jnp.mean(jnp.maximum(neg_sim - pos_sim + margin, 0.0))


if __name__ == "__main__":
    key = jax.random.PRNGKey(0)
    k1, k2, k3 = jax.random.split(key, 3)

    # Small embeddings consistent with the module: (batch, hidden).
    B, D = 8, 32
    anchor = jax.random.normal(k1, (B, D), dtype=jnp.float32)
    positive = jax.random.normal(k2, (B, D), dtype=jnp.float32)
    negative = jax.random.normal(k3, (B, D), dtype=jnp.float32)

    loss = jax.block_until_ready(cosine_triplet_loss(anchor, positive, negative))
    ref = _reference(anchor, positive, negative)
    assert jnp.allclose(loss, ref, atol=1e-5, rtol=1e-5), (loss, ref)

    # Lane-packed path, multiple tiles, ragged last tile, non-default margin.
    B2 = 40
    k4, k5, k6 = jax.random.split(jax.random.PRNGKey(1), 3)
    a2 = jax.random.normal(k4, (B2, D), dtype=jnp.float32)
    p2 = jax.random.normal(k5, (B2, D), dtype=jnp.float32)
    n2 = jax.random.normal(k6, (B2, D), dtype=jnp.float32)
    loss2 = jax.block_until_ready(
        cosine_triplet_loss(a2, p2, n2, margin=0.25, block_rows=8))
    ref2 = _reference(a2, p2, n2, margin=0.25)
    assert jnp.allclose(loss2, ref2, atol=1e-5, rtol=1e-5), (loss2, ref2)

    # Unpacked path (D a multiple of 128), auto tile choice, ragged last tile.
    B3, D3 = 12, 256
    k7, k8, k9 = jax.random.split(jax.random.PRNGKey(2), 3)
    a3 = jax.random.normal(k7, (B3, D3), dtype=jnp.float32)
    p3 = jax.random.normal(k8, (B3, D3), dtype=jnp.float32)
    n3 = jax.random.normal(k9, (B3, D3), dtype=jnp.float32)
    loss3 = jax.block_until_ready(cosine_triplet_loss(a3, p3, n3))
    ref3 = _reference(a3, p3, n3)
    assert jnp.allclose(loss3, ref3, atol=1e-5, rtol=1e-5), (loss3, ref3)

    print("KERNEL_OK")
</pallas_src>

<mosaic_0001>
module attributes {stable_mosaic.version = 11 : i64} {
  func.func @_cosine_triplet_kernel(%arg0: i32, %arg1: memref<2x128xf32, #tpu.memory_space<vmem>>, %arg2: memref<2x128xf32, #tpu.memory_space<vmem>>, %arg3: memref<2x128xf32, #tpu.memory_space<vmem>>, %arg4: memref<1x128xf32, #tpu.memory_space<vmem>>) attributes {dimension_semantics = [#tpu.dimension_semantics<parallel>], iteration_bounds = array<i64: 1>, scalar_prefetch = 0 : i64, scratch_operands = 0 : i64, tpu.core_type = #tpu.core_type<tc>, window_params = [{transform_indices = @transform_0, window_bounds = array<i64: 2, 128>}, {transform_indices = @transform_1, window_bounds = array<i64: 2, 128>}, {transform_indices = @transform_2, window_bounds = array<i64: 2, 128>}, {transform_indices = @transform_3, window_bounds = array<i64: 1, 128>}]} {
    %c0 = arith.constant 0 : index
    %c0_0 = arith.constant 0 : index
    %0 = vector.load %arg1[%c0, %c0_0] : memref<2x128xf32, #tpu.memory_space<vmem>>, vector<2x128xf32>
    %c0_1 = arith.constant 0 : index
    %c0_2 = arith.constant 0 : index
    %1 = vector.load %arg2[%c0_1, %c0_2] : memref<2x128xf32, #tpu.memory_space<vmem>>, vector<2x128xf32>
    %c0_3 = arith.constant 0 : index
    %c0_4 = arith.constant 0 : index
    %2 = vector.load %arg3[%c0_3, %c0_4] : memref<2x128xf32, #tpu.memory_space<vmem>>, vector<2x128xf32>
    %3 = arith.mulf %0, %1 : vector<2x128xf32>
    %4 = arith.mulf %0, %2 : vector<2x128xf32>
    %5 = arith.mulf %0, %0 : vector<2x128xf32>
    %6 = arith.mulf %1, %1 : vector<2x128xf32>
    %7 = arith.mulf %2, %2 : vector<2x128xf32>
    %c2_i32 = arith.constant 2 : i32
    %8 = arith.muli %arg0, %c2_i32 : i32
    %9 = tpu.iota {dimensions = array<i32: 0>} : vector<2x1xi32>
    %10 = vector.broadcast %8 : i32 to vector<2x1xi32>
    %11 = arith.addi %9, %10 : vector<2x1xi32>
    %c2_i32_5 = arith.constant 2 : i32
    %12 = vector.broadcast %c2_i32_5 : i32 to vector<2x1xi32>
    %13 = arith.cmpi slt, %11, %12 : vector<2x1xi32>
    %14 = vector.extract_strided_slice %3 {offsets = [0, 0], sizes = [2, 32], strides = [1, 1]} : vector<2x128xf32> to vector<2x32xf32>
    %cst = arith.constant dense<0.000000e+00> : vector<2xf32>
    %15 = vector.multi_reduction <add>, %14, %cst [1] : vector<2x32xf32> to vector<2xf32>
    %16 = vector.shape_cast %15 : vector<2xf32> to vector<2x1xf32>
    %17 = vector.extract_strided_slice %4 {offsets = [0, 0], sizes = [2, 32], strides = [1, 1]} : vector<2x128xf32> to vector<2x32xf32>
    %cst_6 = arith.constant dense<0.000000e+00> : vector<2xf32>
    %18 = vector.multi_reduction <add>, %17, %cst_6 [1] : vector<2x32xf32> to vector<2xf32>
    %19 = vector.shape_cast %18 : vector<2xf32> to vector<2x1xf32>
    %20 = vector.extract_strided_slice %5 {offsets = [0, 0], sizes = [2, 32], strides = [1, 1]} : vector<2x128xf32> to vector<2x32xf32>
    %cst_7 = arith.constant dense<0.000000e+00> : vector<2xf32>
    %21 = vector.multi_reduction <add>, %20, %cst_7 [1] : vector<2x32xf32> to vector<2xf32>
    %22 = vector.shape_cast %21 : vector<2xf32> to vector<2x1xf32>
    %23 = vector.extract_strided_slice %6 {offsets = [0, 0], sizes = [2, 32], strides = [1, 1]} : vector<2x128xf32> to vector<2x32xf32>
    %cst_8 = arith.constant dense<0.000000e+00> : vector<2xf32>
    %24 = vector.multi_reduction <add>, %23, %cst_8 [1] : vector<2x32xf32> to vector<2xf32>
    %25 = vector.shape_cast %24 : vector<2xf32> to vector<2x1xf32>
    %26 = vector.extract_strided_slice %7 {offsets = [0, 0], sizes = [2, 32], strides = [1, 1]} : vector<2x128xf32> to vector<2x32xf32>
    %cst_9 = arith.constant dense<0.000000e+00> : vector<2xf32>
    %27 = vector.multi_reduction <add>, %26, %cst_9 [1] : vector<2x32xf32> to vector<2xf32>
    %28 = vector.shape_cast %27 : vector<2xf32> to vector<2x1xf32>
    %29 = math.rsqrt %22 : vector<2x1xf32>
    %cst_10 = arith.constant 1.000000e+06 : f32
    %30 = vector.broadcast %cst_10 : f32 to vector<2x1xf32>
    %31 = arith.minimumf %29, %30 : vector<2x1xf32>
    %32 = math.rsqrt %25 : vector<2x1xf32>
    %cst_11 = arith.constant 1.000000e+06 : f32
    %33 = vector.broadcast %cst_11 : f32 to vector<2x1xf32>
    %34 = arith.minimumf %32, %33 : vector<2x1xf32>
    %35 = math.rsqrt %28 : vector<2x1xf32>
    %cst_12 = arith.constant 1.000000e+06 : f32
    %36 = vector.broadcast %cst_12 : f32 to vector<2x1xf32>
    %37 = arith.minimumf %35, %36 : vector<2x1xf32>
    %38 = arith.mulf %16, %31 : vector<2x1xf32>
    %39 = arith.mulf %38, %34 : vector<2x1xf32>
    %40 = arith.mulf %19, %31 : vector<2x1xf32>
    %41 = arith.mulf %40, %37 : vector<2x1xf32>
    %42 = arith.subf %41, %39 : vector<2x1xf32>
    %cst_13 = arith.constant 1.000000e-01 : f32
    %43 = vector.broadcast %cst_13 : f32 to vector<2x1xf32>
    %44 = arith.addf %42, %43 : vector<2x1xf32>
    %cst_14 = arith.constant 0.000000e+00 : f32
    %45 = vector.broadcast %cst_14 : f32 to vector<2x1xf32>
    %46 = arith.maximumf %44, %45 : vector<2x1xf32>
    %cst_15 = arith.constant 0.000000e+00 : f32
    %47 = vector.broadcast %cst_15 : f32 to vector<2x1xf32>
    %48 = arith.select %13, %46, %47 : vector<2x1xi1>, vector<2x1xf32>
    %49 = vector.shape_cast %48 : vector<2x1xf32> to vector<1x2x1xf32>
    %cst_16 = arith.constant dense<0.000000e+00> : vector<1xf32>
    %50 = vector.multi_reduction <add>, %49, %cst_16 [1, 2] : vector<1x2x1xf32> to vector<1xf32>
    %51 = vector.shape_cast %50 : vector<1xf32> to vector<1x1x1xf32>
    %52 = vector.extract %51[0, 0, 0] : f32 from vector<1x1x1xf32>
    %cst_17 = arith.constant 0.000000e+00 : f32
    %53 = arith.addf %cst_17, %52 : f32
    %54 = vector.extract_strided_slice %3 {offsets = [0, 32], sizes = [2, 32], strides = [1, 1]} : vector<2x128xf32> to vector<2x32xf32>
    %cst_18 = arith.constant dense<0.000000e+00> : vector<2xf32>
    %55 = vector.multi_reduction <add>, %54, %cst_18 [1] : vector<2x32xf32> to vector<2xf32>
    %56 = vector.shape_cast %55 : vector<2xf32> to vector<2x1xf32>
    %57 = vector.extract_strided_slice %4 {offsets = [0, 32], sizes = [2, 32], strides = [1, 1]} : vector<2x128xf32> to vector<2x32xf32>
    %cst_19 = arith.constant dense<0.000000e+00> : vector<2xf32>
    %58 = vector.multi_reduction <add>, %57, %cst_19 [1] : vector<2x32xf32> to vector<2xf32>
    %59 = vector.shape_cast %58 : vector<2xf32> to vector<2x1xf32>
    %60 = vector.extract_strided_slice %5 {offsets = [0, 32], sizes = [2, 32], strides = [1, 1]} : vector<2x128xf32> to vector<2x32xf32>
    %cst_20 = arith.constant dense<0.000000e+00> : vector<2xf32>
    %61 = vector.multi_reduction <add>, %60, %cst_20 [1] : vector<2x32xf32> to vector<2xf32>
    %62 = vector.shape_cast %61 : vector<2xf32> to vector<2x1xf32>
    %63 = vector.extract_strided_slice %6 {offsets = [0, 32], sizes = [2, 32], strides = [1, 1]} : vector<2x128xf32> to vector<2x32xf32>
    %cst_21 = arith.constant dense<0.000000e+00> : vector<2xf32>
    %64 = vector.multi_reduction <add>, %63, %cst_21 [1] : vector<2x32xf32> to vector<2xf32>
    %65 = vector.shape_cast %64 : vector<2xf32> to vector<2x1xf32>
    %66 = vector.extract_strided_slice %7 {offsets = [0, 32], sizes = [2, 32], strides = [1, 1]} : vector<2x128xf32> to vector<2x32xf32>
    %cst_22 = arith.constant dense<0.000000e+00> : vector<2xf32>
    %67 = vector.multi_reduction <add>, %66, %cst_22 [1] : vector<2x32xf32> to vector<2xf32>
    %68 = vector.shape_cast %67 : vector<2xf32> to vector<2x1xf32>
    %69 = math.rsqrt %62 : vector<2x1xf32>
    %cst_23 = arith.constant 1.000000e+06 : f32
    %70 = vector.broadcast %cst_23 : f32 to vector<2x1xf32>
    %71 = arith.minimumf %69, %70 : vector<2x1xf32>
    %72 = math.rsqrt %65 : vector<2x1xf32>
    %cst_24 = arith.constant 1.000000e+06 : f32
    %73 = vector.broadcast %cst_24 : f32 to vector<2x1xf32>
    %74 = arith.minimumf %72, %73 : vector<2x1xf32>
    %75 = math.rsqrt %68 : vector<2x1xf32>
    %cst_25 = arith.constant 1.000000e+06 : f32
    %76 = vector.broadcast %cst_25 : f32 to vector<2x1xf32>
    %77 = arith.minimumf %75, %76 : vector<2x1xf32>
    %78 = arith.mulf %56, %71 : vector<2x1xf32>
    %79 = arith.mulf %78, %74 : vector<2x1xf32>
    %80 = arith.mulf %59, %71 : vector<2x1xf32>
    %81 = arith.mulf %80, %77 : vector<2x1xf32>
    %82 = arith.subf %81, %79 : vector<2x1xf32>
    %cst_26 = arith.constant 1.000000e-01 : f32
    %83 = vector.broadcast %cst_26 : f32 to vector<2x1xf32>
    %84 = arith.addf %82, %83 : vector<2x1xf32>
    %cst_27 = arith.constant 0.000000e+00 : f32
    %85 = vector.broadcast %cst_27 : f32 to vector<2x1xf32>
    %86 = arith.maximumf %84, %85 : vector<2x1xf32>
    %cst_28 = arith.constant 0.000000e+00 : f32
    %87 = vector.broadcast %cst_28 : f32 to vector<2x1xf32>
    %88 = arith.select %13, %86, %87 : vector<2x1xi1>, vector<2x1xf32>
    %89 = vector.shape_cast %88 : vector<2x1xf32> to vector<1x2x1xf32>
    %cst_29 = arith.constant dense<0.000000e+00> : vector<1xf32>
    %90 = vector.multi_reduction <add>, %89, %cst_29 [1, 2] : vector<1x2x1xf32> to vector<1xf32>
    %91 = vector.shape_cast %90 : vector<1xf32> to vector<1x1x1xf32>
    %92 = vector.extract %91[0, 0, 0] : f32 from vector<1x1x1xf32>
    %93 = arith.addf %53, %92 : f32
    %94 = vector.extract_strided_slice %3 {offsets = [0, 64], sizes = [2, 32], strides = [1, 1]} : vector<2x128xf32> to vector<2x32xf32>
    %cst_30 = arith.constant dense<0.000000e+00> : vector<2xf32>
    %95 = vector.multi_reduction <add>, %94, %cst_30 [1] : vector<2x32xf32> to vector<2xf32>
    %96 = vector.shape_cast %95 : vector<2xf32> to vector<2x1xf32>
    %97 = vector.extract_strided_slice %4 {offsets = [0, 64], sizes = [2, 32], strides = [1, 1]} : vector<2x128xf32> to vector<2x32xf32>
    %cst_31 = arith.constant dense<0.000000e+00> : vector<2xf32>
    %98 = vector.multi_reduction <add>, %97, %cst_31 [1] : vector<2x32xf32> to vector<2xf32>
    %99 = vector.shape_cast %98 : vector<2xf32> to vector<2x1xf32>
    %100 = vector.extract_strided_slice %5 {offsets = [0, 64], sizes = [2, 32], strides = [1, 1]} : vector<2x128xf32> to vector<2x32xf32>
    %cst_32 = arith.constant dense<0.000000e+00> : vector<2xf32>
    %101 = vector.multi_reduction <add>, %100, %cst_32 [1] : vector<2x32xf32> to vector<2xf32>
    %102 = vector.shape_cast %101 : vector<2xf32> to vector<2x1xf32>
    %103 = vector.extract_strided_slice %6 {offsets = [0, 64], sizes = [2, 32], strides = [1, 1]} : vector<2x128xf32> to vector<2x32xf32>
    %cst_33 = arith.constant dense<0.000000e+00> : vector<2xf32>
    %104 = vector.multi_reduction <add>, %103, %cst_33 [1] : vector<2x32xf32> to vector<2xf32>
    %105 = vector.shape_cast %104 : vector<2xf32> to vector<2x1xf32>
    %106 = vector.extract_strided_slice %7 {offsets = [0, 64], sizes = [2, 32], strides = [1, 1]} : vector<2x128xf32> to vector<2x32xf32>
    %cst_34 = arith.constant dense<0.000000e+00> : vector<2xf32>
    %107 = vector.multi_reduction <add>, %106, %cst_34 [1] : vector<2x32xf32> to vector<2xf32>
    %108 = vector.shape_cast %107 : vector<2xf32> to vector<2x1xf32>
    %109 = math.rsqrt %102 : vector<2x1xf32>
    %cst_35 = arith.constant 1.000000e+06 : f32
    %110 = vector.broadcast %cst_35 : f32 to vector<2x1xf32>
    %111 = arith.minimumf %109, %110 : vector<2x1xf32>
    %112 = math.rsqrt %105 : vector<2x1xf32>
    %cst_36 = arith.constant 1.000000e+06 : f32
    %113 = vector.broadcast %cst_36 : f32 to vector<2x1xf32>
    %114 = arith.minimumf %112, %113 : vector<2x1xf32>
    %115 = math.rsqrt %108 : vector<2x1xf32>
    %cst_37 = arith.constant 1.000000e+06 : f32
    %116 = vector.broadcast %cst_37 : f32 to vector<2x1xf32>
    %117 = arith.minimumf %115, %116 : vector<2x1xf32>
    %118 = arith.mulf %96, %111 : vector<2x1xf32>
    %119 = arith.mulf %118, %114 : vector<2x1xf32>
    %120 = arith.mulf %99, %111 : vector<2x1xf32>
    %121 = arith.mulf %120, %117 : vector<2x1xf32>
    %122 = arith.subf %121, %119 : vector<2x1xf32>
    %cst_38 = arith.constant 1.000000e-01 : f32
    %123 = vector.broadcast %cst_38 : f32 to vector<2x1xf32>
    %124 = arith.addf %122, %123 : vector<2x1xf32>
    %cst_39 = arith.constant 0.000000e+00 : f32
    %125 = vector.broadcast %cst_39 : f32 to vector<2x1xf32>
    %126 = arith.maximumf %124, %125 : vector<2x1xf32>
    %cst_40 = arith.constant 0.000000e+00 : f32
    %127 = vector.broadcast %cst_40 : f32 to vector<2x1xf32>
    %128 = arith.select %13, %126, %127 : vector<2x1xi1>, vector<2x1xf32>
    %129 = vector.shape_cast %128 : vector<2x1xf32> to vector<1x2x1xf32>
    %cst_41 = arith.constant dense<0.000000e+00> : vector<1xf32>
    %130 = vector.multi_reduction <add>, %129, %cst_41 [1, 2] : vector<1x2x1xf32> to vector<1xf32>
    %131 = vector.shape_cast %130 : vector<1xf32> to vector<1x1x1xf32>
    %132 = vector.extract %131[0, 0, 0] : f32 from vector<1x1x1xf32>
    %133 = arith.addf %93, %132 : f32
    %134 = vector.extract_strided_slice %3 {offsets = [0, 96], sizes = [2, 32], strides = [1, 1]} : vector<2x128xf32> to vector<2x32xf32>
    %cst_42 = arith.constant dense<0.000000e+00> : vector<2xf32>
    %135 = vector.multi_reduction <add>, %134, %cst_42 [1] : vector<2x32xf32> to vector<2xf32>
    %136 = vector.shape_cast %135 : vector<2xf32> to vector<2x1xf32>
    %137 = vector.extract_strided_slice %4 {offsets = [0, 96], sizes = [2, 32], strides = [1, 1]} : vector<2x128xf32> to vector<2x32xf32>
    %cst_43 = arith.constant dense<0.000000e+00> : vector<2xf32>
    %138 = vector.multi_reduction <add>, %137, %cst_43 [1] : vector<2x32xf32> to vector<2xf32>
    %139 = vector.shape_cast %138 : vector<2xf32> to vector<2x1xf32>
    %140 = vector.extract_strided_slice %5 {offsets = [0, 96], sizes = [2, 32], strides = [1, 1]} : vector<2x128xf32> to vector<2x32xf32>
    %cst_44 = arith.constant dense<0.000000e+00> : vector<2xf32>
    %141 = vector.multi_reduction <add>, %140, %cst_44 [1] : vector<2x32xf32> to vector<2xf32>
    %142 = vector.shape_cast %141 : vector<2xf32> to vector<2x1xf32>
    %143 = vector.extract_strided_slice %6 {offsets = [0, 96], sizes = [2, 32], strides = [1, 1]} : vector<2x128xf32> to vector<2x32xf32>
    %cst_45 = arith.constant dense<0.000000e+00> : vector<2xf32>
    %144 = vector.multi_reduction <add>, %143, %cst_45 [1] : vector<2x32xf32> to vector<2xf32>
    %145 = vector.shape_cast %144 : vector<2xf32> to vector<2x1xf32>
    %146 = vector.extract_strided_slice %7 {offsets = [0, 96], sizes = [2, 32], strides = [1, 1]} : vector<2x128xf32> to vector<2x32xf32>
    %cst_46 = arith.constant dense<0.000000e+00> : vector<2xf32>
    %147 = vector.multi_reduction <add>, %146, %cst_46 [1] : vector<2x32xf32> to vector<2xf32>
    %148 = vector.shape_cast %147 : vector<2xf32> to vector<2x1xf32>
    %149 = math.rsqrt %142 : vector<2x1xf32>
    %cst_47 = arith.constant 1.000000e+06 : f32
    %150 = vector.broadcast %cst_47 : f32 to vector<2x1xf32>
    %151 = arith.minimumf %149, %150 : vector<2x1xf32>
    %152 = math.rsqrt %145 : vector<2x1xf32>
    %cst_48 = arith.constant 1.000000e+06 : f32
    %153 = vector.broadcast %cst_48 : f32 to vector<2x1xf32>
    %154 = arith.minimumf %152, %153 : vector<2x1xf32>
    %155 = math.rsqrt %148 : vector<2x1xf32>
    %cst_49 = arith.constant 1.000000e+06 : f32
    %156 = vector.broadcast %cst_49 : f32 to vector<2x1xf32>
    %157 = arith.minimumf %155, %156 : vector<2x1xf32>
    %158 = arith.mulf %136, %151 : vector<2x1xf32>
    %159 = arith.mulf %158, %154 : vector<2x1xf32>
    %160 = arith.mulf %139, %151 : vector<2x1xf32>
    %161 = arith.mulf %160, %157 : vector<2x1xf32>
    %162 = arith.subf %161, %159 : vector<2x1xf32>
    %cst_50 = arith.constant 1.000000e-01 : f32
    %163 = vector.broadcast %cst_50 : f32 to vector<2x1xf32>
    %164 = arith.addf %162, %163 : vector<2x1xf32>
    %cst_51 = arith.constant 0.000000e+00 : f32
    %165 = vector.broadcast %cst_51 : f32 to vector<2x1xf32>
    %166 = arith.maximumf %164, %165 : vector<2x1xf32>
    %cst_52 = arith.constant 0.000000e+00 : f32
    %167 = vector.broadcast %cst_52 : f32 to vector<2x1xf32>
    %168 = arith.select %13, %166, %167 : vector<2x1xi1>, vector<2x1xf32>
    %169 = vector.shape_cast %168 : vector<2x1xf32> to vector<1x2x1xf32>
    %cst_53 = arith.constant dense<0.000000e+00> : vector<1xf32>
    %170 = vector.multi_reduction <add>, %169, %cst_53 [1, 2] : vector<1x2x1xf32> to vector<1xf32>
    %171 = vector.shape_cast %170 : vector<1xf32> to vector<1x1x1xf32>
    %172 = vector.extract %171[0, 0, 0] : f32 from vector<1x1x1xf32>
    %173 = arith.addf %133, %172 : f32
    %174 = tpu.iota {dimensions = array<i32: 1>} : vector<1x128xi32>
    %c0_i32 = arith.constant 0 : i32
    %175 = vector.broadcast %c0_i32 : i32 to vector<1x128xi32>
    %176 = arith.cmpi eq, %174, %175 : vector<1x128xi32>
    %cst_54 = arith.constant 0.000000e+00 : f32
    %177 = vector.broadcast %173 : f32 to vector<1x128xf32>
    %178 = vector.broadcast %cst_54 : f32 to vector<1x128xf32>
    %179 = arith.select %176, %177, %178 : vector<1x128xi1>, vector<1x128xf32>
    %c0_55 = arith.constant 0 : index
    %c0_56 = arith.constant 0 : index
    %180 = vector.load %arg4[%c0_55, %c0_56] : memref<1x128xf32, #tpu.memory_space<vmem>>, vector<1x128xf32>
    tpu.vector_store %arg4[%c0_55, %c0_56], %179 {strides = array<i32>} : memref<1x128xf32, #tpu.memory_space<vmem>>, vector<1x128xf32>,
    return
  }
  func.func @transform_0(%arg0: i32) -> (i32, i32) {
    %c0_i32 = arith.constant 0 : i32
    %c0_i32_0 = arith.constant 0 : i32
    return %arg0, %c0_i32 : i32, i32
  }
  func.func @transform_1(%arg0: i32) -> (i32, i32) {
    %c0_i32 = arith.constant 0 : i32
    %c0_i32_0 = arith.constant 0 : i32
    return %arg0, %c0_i32 : i32, i32
  }
  func.func @transform_2(%arg0: i32) -> (i32, i32) {
    %c0_i32 = arith.constant 0 : i32
    %c0_i32_0 = arith.constant 0 : i32
    return %arg0, %c0_i32 : i32, i32
  }
  func.func @transform_3(%arg0: i32) -> (i32, i32) {
    %c0_i32 = arith.constant 0 : i32
    %c0_i32_0 = arith.constant 0 : i32
    return %c0_i32, %arg0 : i32, i32
  }
}

</mosaic_0001>

<bundles_post_ra>
// kernel: tpu_custom_call.1
= control target key start
LH: loop header
LB: loop body
LE: loop exit
PB: predicated region body
PF: predicated region fallthrough
CT: control target
= control target key end

     0   :  { %8 = vsyncpa [#allocation3], 0  ;;  %s543_s0 = inlined_call_operand.hbm [shape: f32[2,128], index: 0, kind: input, shape index: {}]   ;;  %s544_s1 = inlined_call_operand.hbm [shape: f32[2,128], index: 1, kind: input, shape index: {}]   ;;  %s545_s2 = inlined_call_operand.hbm [shape: f32[2,128], index: 2, kind: input, shape index: {}]   ;;  %s546_s3 = inlined_call_operand.hbm [shape: f32[1,128], index: 3, kind: output, shape index: {}]  }
   0x1   :  { %9 = vsyncpa [#allocation6], 0 }
   0x2   :  { %10 = vsyncpa [#allocation4], 0  ;;  %s431_s12 = smov [#allocation5]   ;;  %s432_s14 = smov [#allocation2]  }
   0x3   :  { %s27_s13 = sshll.u32 %s431_s12, 4  ;;  %s17_s15 = sshll.u32 %s432_s14, 4  ;;  %s28_s13 = int_to_ptr.vmem [resolvable:$true] %s27_s13  ;;  %s18_s15 = int_to_ptr.vmem [resolvable:$true] %s17_s15 }
   0x4   :  { %s337_s18 = scalar_lea.hbm %s544_s1, 32 }
   0x5   :  { %p338_p0 = scmp.ne.s32.totalorder %s544_s1, %s337_s18  ;;  %p341_p1 = scmp.lt.u32.totalorder %s337_s18, %s544_s1 }
   0x7   :  { %p343_p2 = pnand %p341_p1, %p338_p0 }
   0x9   :  { %346 = shalt.err (!%p343_p2)
}
   0xa   :  { %s347_s23 = scalar_lea.vmem %s28_s13, 32  ;;  %p352_p4 = scmp.lt.s32.totalorder %s28_s13, %s28_s13 }
   0xb   :  { %p348_p3 = scmp.ne.s32.totalorder %s28_s13, %s347_s23  ;;  %p353_p5 = scmp.lt.s32.totalorder %s347_s23, %s347_s23 }
   0xd   :  { %p354_p6 = por %p353_p5, %p352_p4 }
   0xf   :  { %p355_p7 = pnand %p354_p6, %p348_p3 }
  0x11   :  { %358 = shalt.err (!%p355_p7)
}
  0x12   :  { %30 = dma.hbm_to_vmem [thread:$0]  %s544_s1, 32, %s28_s13, [#allocation6]  }
  0x13   :  { %s359_s28 = scalar_lea.hbm %s543_s0, 32 }
  0x14   :  { %p360_p8 = scmp.ne.s32.totalorder %s543_s0, %s359_s28  ;;  %p363_p9 = scmp.lt.u32.totalorder %s359_s28, %s543_s0 }
  0x16   :  { %p365_p10 = pnand %p363_p9, %p360_p8 }
  0x18   :  { %368 = shalt.err (!%p365_p10)
}
  0x19   :  { %s369_s6 = scalar_lea.vmem %s18_s15, 32  ;;  %p374_p12 = scmp.lt.s32.totalorder %s18_s15, %s18_s15 }
  0x1a   :  { %p370_p11 = scmp.ne.s32.totalorder %s18_s15, %s369_s6  ;;  %p375_p13 = scmp.lt.s32.totalorder %s369_s6, %s369_s6 }
  0x1c   :  { %p376_p0 = por %p375_p13, %p374_p12 }
  0x1e   :  { %p377_p1 = pnand %p376_p0, %p370_p11 }
  0x20   :  { %380 = shalt.err (!%p377_p1)
}
  0x21   :  { %20 = dma.hbm_to_vmem [thread:$0]  %s543_s0, 32, %s18_s15, [#allocation3]  }
  0x22   :  { %s433_s8 = smov [#allocation7]   ;;  %s381_s12 = scalar_lea.hbm %s545_s2, 32 }
  0x23   :  { %s37_s9 = sshll.u32 %s433_s8, 4  ;;  %p382_p2 = scmp.ne.s32.totalorder %s545_s2, %s381_s12  ;;  %s38_s9 = int_to_ptr.vmem [resolvable:$true] %s37_s9 }
  0x24   :  { %p385_p3 = scmp.lt.u32.totalorder %s381_s12, %s545_s2 }
  0x26   :  { %p387_p4 = pnand %p385_p3, %p382_p2 }
  0x28   :  { %390 = shalt.err (!%p387_p4)
}
  0x29   :  { %s391_s18 = scalar_lea.vmem %s38_s9, 32  ;;  %p396_p6 = scmp.lt.s32.totalorder %s38_s9, %s38_s9 }
  0x2a   :  { %p392_p5 = scmp.ne.s32.totalorder %s38_s9, %s391_s18  ;;  %p397_p7 = scmp.lt.s32.totalorder %s391_s18, %s391_s18 }
  0x2c   :  { %p398_p8 = por %p397_p7, %p396_p6 }
  0x2e   :  { %p399_p9 = pnand %p398_p8, %p392_p5 }
  0x30   :  { %402 = shalt.err (!%p399_p9)
}
  0x31   :  { %40 = dma.hbm_to_vmem [thread:$0]  %s545_s2, 32, %s38_s9, [#allocation6]  }
  0x32   :  { %425 = dma.done.wait [#allocation3], 32  }
  0x33   :  { %426 = vsyncadd [#allocation3], 4294967264 }
  0x34   :  { %427 = dma.done.wait [#allocation6], 64  }
  0x35   :  { %428 = vsyncadd [#allocation6], 4294967232  ;;  %vm64_vm0 = vcmask 254976   ;;  %v50_v0 = vld [vmem:[#allocation2] sm:$0x3]  ;;  %s434_s2 = smov 96   ;;  %v59_v47 = vlaneseq }
  0x36   :  { %v51_v1 = vld [vmem:[#allocation5] sm:$0x3]  ;;  %v52_v2 = vld [vmem:[#allocation7] sm:$0x3]  ;;  %v55_v3 = vmul.f32 %v50_v0, %v50_v0  ;;  %s435_s19 = smov 64   ;;  %s436_s20 = smov 32  }
  0x37   :  { %v53_v4 = vmul.f32 %v51_v1, %v50_v0  ;;  %v56_v5 = vmul.f32 %v51_v1, %v51_v1  ;;  %v54_v6 = vmul.f32 %v52_v2, %v50_v0  ;;  %v57_v11 = vmul.f32 %v52_v2, %v52_v2  ;;  %s437_s27 = smov [#allocation8]  }
  0x38   :  { %v71_v7 = vsel %vm64_vm0, %v55_v3, 0.0  ;;  %v509_v53 = vshrl.u32 %v59_v47, 7  ;;  %vm94_vm2 = vcmask 1024   ;;  %s288_s28 = sshll.u32 %s437_s27, 4  ;;  %s289_s28 = int_to_ptr.vmem [resolvable:$true] %s288_s28 }
  0x39   :  { %v65_v8 = vsel %vm64_vm0, %v53_v4, 0.0  ;;  %72 = vadd.xlane.f32.xlu1 %v71_v7  ;;  %v74_v9 = vsel %vm64_vm0, %v56_v5, 0.0  ;;  %v68_v10 = vsel %vm64_vm0, %v54_v6, 0.0  ;;  %v77_v12 = vsel %vm64_vm0, %v57_v11, 0.0  ;;  %s403_s30 = scalar_lea.vmem %s289_s28, 16  ;;  %s407_s4 = scalar_lea.vmem %s289_s28, 32 }
  0x3a   :  { %66 = vadd.xlane.f32.xlu0 %v65_v8  ;;  %vm63_vm1 = vcmp.lt.s32.totalorder %v509_v53, 2  ;;  %p404_p10 = scmp.ne.s32.totalorder %s289_s28, %s403_s30  ;;  %p408_p11 = scmp.lt.s32.totalorder %s289_s28, %s289_s28 }
  0x3b   :  { %p409_p12 = scmp.lt.s32.totalorder %s407_s4, %s403_s30 }
  0x3d   :  { %75 = vadd.xlane.f32.xlu1 %v74_v9  ;;  %p410_p13 = por %p409_p12, %p408_p11 }
  0x3e   :  { %69 = vadd.xlane.f32.xlu0 %v68_v10 }
  0x3f   :  { %p411_p0 = pnand %p410_p13, %p404_p10 }
  0x42   :  { %78 = vadd.xlane.f32.xlu0 %v77_v12 }
  0x4e   :  { %114 = vrot.lane.b32.xlu1 %v54_v6, %s434_s2 }
  0x52   :  { %135 = vrot.lane.b32.xlu1 %v57_v11, %s434_s2 }
  0x56   :  { %178 = vrot.lane.b32.xlu1 %v55_v3, %s435_s19 }
  0x58   :  { %107 = vrot.lane.b32.xlu0 %v53_v4, %s434_s2 }
  0x5a   :  { %190 = vrot.lane.b32.xlu1 %v57_v11, %s435_s19 }
  0x5c   :  { %121 = vrot.lane.b32.xlu0 %v55_v3, %s434_s2 }
  0x5e   :  { %239 = vrot.lane.b32.xlu1 %v56_v5, %s436_s20 }
  0x60   :  { %128 = vrot.lane.b32.xlu0 %v56_v5, %s434_s2 }
  0x62   :  { %166 = vrot.lane.b32.xlu1 %v53_v4, %s435_s19 }
  0x64   :  { %184 = vrot.lane.b32.xlu0 %v56_v5, %s435_s19 }
  0x66   :  { %221 = vrot.lane.b32.xlu1 %v53_v4, %s436_s20 }
  0x68   :  { %233 = vrot.lane.b32.xlu0 %v55_v3, %s436_s20 }
  0x6c   :  { %245 = vrot.lane.b32.xlu0 %v57_v11, %s436_s20 }
  0x70   :  { %172 = vrot.lane.b32.xlu0 %v54_v6, %s435_s19 }
  0x74   :  { %227 = vrot.lane.b32.xlu0 %v54_v6, %s436_s20 }
  0xc6   :  { %v73_v13 = vpop.xlane.xlu1 %72 }
  0xc7   :  { %v67_v14 = vpop.xlane.xlu0 %66  ;;  %313 = vrsqrt.f32 %v73_v13 }
  0xca   :  { %v76_v15 = vpop.xlane.xlu1 %75 }
  0xcb   :  { %v70_v16 = vpop.xlane.xlu0 %69 }
  0xce   :  { %v115_v18 = vpop.permute.xlu1 %114 }
  0xcf   :  { %v79_v17 = vpop.xlane.xlu0 %78  ;;  %v117_v25 = vsel %vm64_vm0, %v115_v18, 0.0 }
  0xd0   :  { %315 = vrsqrt.f32 %v79_v17 }
  0xd1   :  { %317 = vrsqrt.f32 %v76_v15  ;;  %v314_v24 = vpop.eup %313 }
  0xd2   :  { %v136_v20 = vpop.permute.xlu1 %135  ;;  %v81_v28 = vmin.f32 %v314_v24, 1000000.0 }
  0xd3   :  { %v108_v19 = vpop.permute.xlu0 %107  ;;  %v138_v38 = vsel %vm64_vm0, %v136_v20, 0.0 }
  0xd4   :  { %v110_v21 = vsel %vm64_vm0, %v108_v19, 0.0  ;;  %v88_v35 = vmul.f32 %v81_v28, %v70_v16  ;;  %v86_v39 = vmul.f32 %v81_v28, %v67_v14 }
  0xd5   :  { %111 = vadd.xlane.f32.xlu1 %v110_v21 }
  0xd6   :  { %v179_v23 = vpop.permute.xlu1 %178 }
  0xd7   :  { %v122_v22 = vpop.permute.xlu0 %121  ;;  %v181_v44 = vsel %vm64_vm0, %v179_v23, 0.0 }
  0xd8   :  { %v124_v26 = vsel %vm64_vm0, %v122_v22, 0.0 }
  0xd9   :  { %118 = vadd.xlane.f32.xlu1 %v117_v25  ;;  %125 = vadd.xlane.f32.xlu0 %v124_v26 }
  0xda   :  { %v316_v27 = vpop.eup %315  ;;  %v191_v30 = vpop.permute.xlu1 %190 }
  0xdb   :  { %v129_v29 = vpop.permute.xlu0 %128  ;;  %v318_v31 = vpop.eup %317  ;;  %v85_v33 = vmin.f32 %v316_v27, 1000000.0  ;;  %v193_v50 = vsel %vm64_vm0, %v191_v30, 0.0 }
  0xdc   :  { %v131_v32 = vsel %vm64_vm0, %v129_v29, 0.0  ;;  %v83_v34 = vmin.f32 %v318_v31, 1000000.0 }
  0xdd   :  { %132 = vadd.xlane.f32.xlu1 %v131_v32  ;;  %v89_v40 = vmul.f32 %v88_v35, %v85_v33 }
  0xde   :  { %v240_v37 = vpop.permute.xlu1 %239  ;;  %v87_v41 = vmul.f32 %v86_v39, %v83_v34 }
  0xdf   :  { %v185_v36 = vpop.permute.xlu0 %184  ;;  %v242_v0 = vsel %vm64_vm0, %v240_v37, 0.0 }
  0xe0   :  { %v90_v46 = vsub.f32 %v89_v40, %v87_v41  ;;  %v187_v59 = vsel %vm64_vm0, %v185_v36, 0.0 }
  0xe1   :  { %139 = vadd.xlane.f32.xlu1 %v138_v38 }
  0xe2   :  { %v167_v43 = vpop.permute.xlu1 %166  ;;  %v91_v51 = vadd.f32 0.1, %v90_v46 }
  0xe3   :  { %v234_v42 = vpop.permute.xlu0 %233  ;;  %v169_v45 = vsel %vm64_vm0, %v167_v43, 0.0 }
  0xe4   :  { %170 = vadd.xlane.f32.xlu0 %v169_v45  ;;  %v92_v56 = vmax.f32 %v91_v51, 0.0  ;;  %v236_v58 = vsel %vm64_vm0, %v234_v42, 0.0 }
  0xe5   :  { %182 = vadd.xlane.f32.xlu1 %v181_v44 }
  0xe6   :  { %v222_v49 = vpop.permute.xlu1 %221  ;;  %v93_v60 = vsel %vm63_vm1, %v92_v56, 0.0 }
  0xe7   :  { %v246_v48 = vpop.permute.xlu0 %245  ;;  %v224_v52 = vsel %vm64_vm0, %v222_v49, 0.0  ;;  %v95_v62 = vsel %vm94_vm2, %v93_v60, 0.0 }
  0xe8   :  { %v248_v63 = vsel %vm64_vm0, %v246_v48, 0.0 }
  0xe9   :  { %194 = vadd.xlane.f32.xlu1 %v193_v50 }
  0xeb   :  { %v173_v54 = vpop.permute.xlu0 %172 }
  0xec   :  { %v175_v55 = vsel %vm64_vm0, %v173_v54, 0.0 }
  0xed   :  { %225 = vadd.xlane.f32.xlu1 %v224_v52  ;;  %176 = vadd.xlane.f32.xlu0 %v175_v55 }
  0xef   :  { %v228_v57 = vpop.permute.xlu0 %227 }
  0xf0   :  { %v230_v61 = vsel %vm64_vm0, %v228_v57, 0.0 }
  0xf1   :  { %237 = vadd.xlane.f32.xlu1 %v236_v58  ;;  %188 = vadd.xlane.f32.xlu0 %v187_v59 }
  0xf5   :  { %96 = vadd.xlane.f32.xlu1 %v95_v62  ;;  %231 = vadd.xlane.f32.xlu0 %v230_v61 }
  0xf9   :  { %249 = vadd.xlane.f32.xlu1 %v248_v63  ;;  %243 = vadd.xlane.f32.xlu0 %v242_v0 }
 0x162   :  { %v112_v1 = vpop.xlane.xlu1 %111 }
 0x166   :  { %v119_v2 = vpop.xlane.xlu1 %118  ;;  %v126_v3 = vpop.xlane.xlu0 %125 }
 0x167   :  { %319 = vrsqrt.f32 %v126_v3 }
 0x16a   :  { %v133_v4 = vpop.xlane.xlu1 %132 }
 0x16b   :  { %321 = vrsqrt.f32 %v133_v4 }
 0x16e   :  { %v140_v5 = vpop.xlane.xlu1 %139 }
 0x16f   :  { %323 = vrsqrt.f32 %v140_v5 }
 0x171   :  { %v320_v7 = vpop.eup %319  ;;  %v171_v8 = vpop.xlane.xlu0 %170 }
 0x172   :  { %v183_v6 = vpop.xlane.xlu1 %182  ;;  %v142_v10 = vmin.f32 %v320_v7, 1000000.0 }
 0x173   :  { %325 = vrsqrt.f32 %v183_v6 }
 0x174   :  { %v147_v14 = vmul.f32 %v142_v10, %v112_v1  ;;  %v149_v15 = vmul.f32 %v142_v10, %v119_v2 }
 0x175   :  { %v322_v9 = vpop.eup %321 }
 0x176   :  { %v195_v11 = vpop.xlane.xlu1 %194  ;;  %v144_v12 = vmin.f32 %v322_v9, 1000000.0 }
 0x177   :  { %327 = vrsqrt.f32 %v195_v11 }
 0x178   :  { %v148_v19 = vmul.f32 %v147_v14, %v144_v12 }
 0x179   :  { %v324_v13 = vpop.eup %323 }
 0x17a   :  { %v146_v16 = vmin.f32 %v324_v13, 1000000.0  ;;  %v226_v17 = vpop.xlane.xlu1 %225  ;;  %v177_v18 = vpop.xlane.xlu0 %176 }
 0x17c   :  { %v150_v20 = vmul.f32 %v149_v15, %v146_v16 }
 0x17d   :  { %v326_v29 = vpop.eup %325 }
 0x17e   :  { %v238_v21 = vpop.xlane.xlu1 %237  ;;  %v189_v22 = vpop.xlane.xlu0 %188  ;;  %v151_v23 = vsub.f32 %v150_v20, %v148_v19  ;;  %v197_v36 = vmin.f32 %v326_v29, 1000000.0 }
 0x17f   :  { %329 = vrsqrt.f32 %v189_v22 }
 0x180   :  { %v152_v24 = vadd.f32 0.1, %v151_v23  ;;  %331 = vrsqrt.f32 %v238_v21  ;;  %v202_v42 = vmul.f32 %v197_v36, %v171_v8  ;;  %v204_v43 = vmul.f32 %v197_v36, %v177_v18 }
 0x181   :  { %v328_v33 = vpop.eup %327 }
 0x182   :  { %v97_v25 = vpop.xlane.xlu1 %96  ;;  %v232_v26 = vpop.xlane.xlu0 %231  ;;  %v153_v27 = vmax.f32 %v152_v24, 0.0  ;;  %v201_v38 = vmin.f32 %v328_v33, 1000000.0 }
 0x183   :  { %v98_v28 = vrot.slane %v97_v25, 4 }
 0x184   :  { %v154_v30 = vsel %vm63_vm1, %v153_v27, 0.0  ;;  %v205_v46 = vmul.f32 %v204_v43, %v201_v38 }
 0x185   :  { %v99_v31 = vadd.f32 %v98_v28, %v97_v25  ;;  %v155_v32 = vsel %vm94_vm2, %v154_v30, 0.0 }
 0x186   :  { %v250_v34 = vpop.xlane.xlu1 %249  ;;  %156 = vadd.xlane.f32.xlu0 %v155_v32  ;;  %v244_v35 = vpop.xlane.xlu0 %243 }
 0x187   :  { %v100_v37 = vrot.slane %v99_v31, 2  ;;  %333 = vrsqrt.f32 %v250_v34 }
 0x188   :  { %335 = vrsqrt.f32 %v244_v35 }
 0x189   :  { %v101_v39 = vadd.f32 %v100_v37, %v99_v31  ;;  %v330_v40 = vpop.eup %329 }
 0x18a   :  { %v332_v41 = vpop.eup %331  ;;  %v199_v44 = vmin.f32 %v330_v40, 1000000.0 }
 0x18b   :  { %v102_v45 = vrot.slane %v101_v39, 1  ;;  %v252_v50 = vmin.f32 %v332_v41, 1000000.0 }
 0x18c   :  { %v203_v48 = vmul.f32 %v202_v42, %v199_v44 }
 0x18d   :  { %v103_v49 = vadd.f32 %v102_v45, %v101_v39  ;;  %v259_v56 = vmul.f32 %v252_v50, %v232_v26  ;;  %v257_v58 = vmul.f32 %v252_v50, %v226_v17  ;;  %v277_v26 = vand.u32 127, %v59_v47 }
 0x18e   :  { %v206_v51 = vsub.f32 %v205_v46, %v203_v48 }
 0x18f   :  { %298 = vpush %v103_v49  ;;  %vm278_vm3 = vcmp.eq.s32.totalorder %v277_v26, 0 }
 0x190   :  { %v207_v54 = vadd.f32 0.1, %v206_v51 }
 0x191   :  { %v334_v52 = vpop.eup %333 }
 0x192   :  { %v336_v55 = vpop.eup %335  ;;  %v256_v57 = vmin.f32 %v334_v52, 1000000.0  ;;  %v208_v60 = vmax.f32 %v207_v54, 0.0 }
 0x193   :  { %v254_v59 = vmin.f32 %v336_v55, 1000000.0 }
 0x194   :  { %v260_v61 = vmul.f32 %v259_v56, %v256_v57  ;;  %v209_v63 = vsel %vm63_vm1, %v208_v60, 0.0 }
 0x195   :  { %v258_v62 = vmul.f32 %v257_v58, %v254_v59  ;;  %v210_v0 = vsel %vm94_vm2, %v209_v63, 0.0 }
 0x196   :  { %211 = vadd.xlane.f32.xlu0 %v210_v0 }
 0x197   :  { %v261_v1 = vsub.f32 %v260_v61, %v258_v62 }
 0x199   :  { %v262_v2 = vadd.f32 0.1, %v261_v1 }
 0x19b   :  { %v263_v3 = vmax.f32 %v262_v2, 0.0 }
 0x19d   :  { %v264_v4 = vsel %vm63_vm1, %v263_v3, 0.0 }
 0x19e   :  { %v265_v5 = vsel %vm94_vm2, %v264_v4, 0.0 }
 0x19f   :  { %266 = vadd.xlane.f32.xlu0 %v265_v5 }
 0x1c0   :  { %s299_s21 = spop %298 }
 0x213   :  { %v157_v6 = vpop.xlane.xlu0 %156 }
 0x214   :  { %v158_v7 = vrot.slane %v157_v6, 4 }
 0x216   :  { %v159_v8 = vadd.f32 %v158_v7, %v157_v6 }
 0x218   :  { %v160_v9 = vrot.slane %v159_v8, 2 }
 0x21a   :  { %v161_v10 = vadd.f32 %v160_v9, %v159_v8 }
 0x21c   :  { %v162_v11 = vrot.slane %v161_v10, 1 }
 0x21e   :  { %v163_v12 = vadd.f32 %v162_v11, %v161_v10 }
 0x220   :  { %300 = vpush %v163_v12 }
 0x223   :  { %v212_v13 = vpop.xlane.xlu0 %211 }
 0x224   :  { %v213_v14 = vrot.slane %v212_v13, 4 }
 0x226   :  { %v214_v15 = vadd.f32 %v213_v14, %v212_v13 }
 0x228   :  { %v215_v16 = vrot.slane %v214_v15, 2 }
 0x22a   :  { %v216_v17 = vadd.f32 %v215_v16, %v214_v15 }
 0x22c   :  { %v267_v18 = vpop.xlane.xlu0 %266  ;;  %v217_v53 = vrot.slane %v216_v17, 1 }
 0x22d   :  { %v268_v19 = vrot.slane %v267_v18, 4 }
 0x22e   :  { %v218_v21 = vadd.f32 %v217_v53, %v216_v17 }
 0x22f   :  { %v269_v20 = vadd.f32 %v268_v19, %v267_v18 }
 0x230   :  { %302 = vpush %v218_v21 }
 0x231   :  { %v270_v22 = vrot.slane %v269_v20, 2 }
 0x233   :  { %v271_v23 = vadd.f32 %v270_v22, %v269_v20 }
 0x235   :  { %v272_v24 = vrot.slane %v271_v23, 1 }
 0x237   :  { %v273_v25 = vadd.f32 %v272_v24, %v271_v23 }
 0x239   :  { %304 = vpush %v273_v25 }
 0x251   :  { %s301_s22 = spop %300 }
 0x252   :  { %s165_s24 = sadd.f32 %s301_s22, %s299_s21 }
 0x261   :  { %s303_s23 = spop %302 }
 0x262   :  { %s220_s25 = sadd.f32 %s303_s23, %s165_s24 }
 0x26a   :  { %s305_s26 = spop %304 }
 0x26b   :  { %s275_s29 = sadd.f32 %s305_s26, %s220_s25 }
 0x26d   :  { %v279_v27 = vstv %s275_s29 }
 0x26e   :  { %v280_v28 = vsel %vm278_vm3, %v279_v27, 0.0 }
 0x26f   :  { %281 = vst [vmem:[#allocation8] sm:$0x1] %v280_v28 }
 0x270   :  { %414 = shalt.err (!%p411_p0)
}
 0x271   :  { %s415_s1 = scalar_lea.hbm %s546_s3, 16 }
 0x272   :  { %p416_p1 = scmp.ne.s32.totalorder %s546_s3, %s415_s1  ;;  %p419_p2 = scmp.lt.u32.totalorder %s415_s1, %s546_s3 }
 0x274   :  { %p421_p3 = pnand %p419_p2, %p416_p1 }
 0x276   :  { %424 = shalt.err (!%p421_p3)
}
 0x277   :  { %291 = dma.vmem_to_hbm [thread:$0]  %s289_s28, 16, %s546_s3, [#allocation4]  }
 0x278   :  { %429 = dma.done.wait [#allocation4], 16  }
 0x279   :  { %430 = vsyncadd [#allocation4], 4294967280 }
 0x27a   :  { %295 = vsyncpa [#allocation3], 1 }
 0x27b   :  { %296 = vsyncpa [#allocation6], 1 }
 0x27c   :  { %297 = vsyncpa [#allocation4], 1 }

</bundles_post_ra>
